<compile_context>
chip_gen: v5e
topology: v5e:2x2
jax: 0.10.0
libtpu: 0.0.40
codegen_flags: <defaults>
</compile_context>

<pallas_src>
import jax
import jax.numpy as jnp
from jax.experimental import pallas as pl
from jax.experimental.pallas import tpu as pltpu


# ---------------------------------------------------------------------------
# Pallas kernel (placeholder copy — the reference forward is empty)
# ---------------------------------------------------------------------------
def _copy_kernel(x_ref, o_ref):
    # Whole-tile passthrough: one (tile_r, tile_c) VMEM tile per grid step.
    o_ref[...] = x_ref[...]


def _vmem_capacity_bytes():
    """Generation-aware VMEM size; conservative (v7x) fallback if unqueryable."""
    try:
        return int(pltpu.get_tpu_info().vmem_capacity_bytes)
    except Exception:
        return 64 * 1024 * 1024  # v7x per-TC VMEM — the smallest of the listed gens


def _identity_pallas(x, *, max_block_bytes=None):
    """Tiled identity copy. Lane-dense blocks, 2-D grid, partial blocks via cdiv.

    NOTE: for a true identity the zero-cost path is to return x directly (or
    pass input_output_aliases={0: 0} to pl.pallas_call to skip the HBM round
    trip); a materialized copy is kept here only so the smoke test can verify
    output vs. input through a real pallas_call.
    """
    R, C = x.shape
    itemsize = jnp.dtype(x.dtype).itemsize

    if max_block_bytes is None:
        # Cap one block at ~1/16 of VMEM: with input+output double buffering
        # (~4x block live) that's ~1/4 of VMEM — 4 MiB blocks on v7x (64 MiB),
        # 8 MiB on v5e/v6e (128 MiB); both fit the 32 MiB scoped default.
        max_block_bytes = max(512 * 1024, _vmem_capacity_bytes() // 16)

    # dtype-aware sublane granularity: 8 for f32, 16 for bf16, 32 for int8 —
    # keeps vregs fully packed on all generations.
    sublane = max(8, 32 // itemsize)

    # --- column (lane) tile ------------------------------------------------
    # Prefer full C (lane-dense, unmasked vst).  Only if even a single
    # sublane-high full-C row block would blow the budget, tile C in
    # multiples of 128 (guards very wide inputs on every generation).
    if C % 128 == 0 and sublane * C * itemsize > max_block_bytes:
        tile_c = (max_block_bytes // (sublane * itemsize)) // 128 * 128
        tile_c = int(min(C, max(128, tile_c)))
    else:
        # Full array extent is always a legal block shape (even if C % 128
        # != 0 — that case lowers to masked stores but stays correct).
        # TODO(synk): for C % 128 != 0 and large R, a wrapper-side reshape to
        # a lane-dense (R', k*128) slab would avoid vst.msk partial stores.
        tile_c = C

    # --- row (sublane) tile ------------------------------------------------
    rows_budget = max_block_bytes // max(tile_c * itemsize, 1)
    rows_budget = max(sublane, (rows_budget // sublane) * sublane)
    tile_r = int(min(R, rows_budget))

    # Partial trailing blocks are handled by Pallas; never fall back to a
    # whole-array block (that can exceed scoped VMEM and kills pipelining).
    grid = (pl.cdiv(R, tile_r), pl.cdiv(C, tile_c))

    return pl.pallas_call(
        _copy_kernel,
        out_shape=jax.ShapeDtypeStruct((R, C), x.dtype),
        grid=grid,
        in_specs=[pl.BlockSpec((tile_r, tile_c), lambda i, j: (i, j))],
        out_specs=pl.BlockSpec((tile_r, tile_c), lambda i, j: (i, j)),
        # Purely bandwidth-bound: tell XLA so it schedules neighbours sanely.
        cost_estimate=pl.CostEstimate(
            flops=0,
            transcendentals=0,
            bytes_accessed=2 * R * C * itemsize,
        ),
        compiler_params=pltpu.CompilerParams(
            # Both axes independent -> shardable across v7x's 2 TensorCores;
            # harmless no-op on single-TC v5e/v6e.
            dimension_semantics=("parallel", "parallel"),
        ),
    )(x)


# ---------------------------------------------------------------------------
# RetargetEncoder equivalent
# ---------------------------------------------------------------------------
class RetargetEncoder:
    """JAX/Pallas port of the (empty) PyTorch RetargetEncoder module."""

    def __init__(self):
        # Reference __init__ is `pass`: no parameters to initialize.
        # TODO(synk): reference module defines no layers; nothing to port.
        pass

    def forward(self):
        # Reference forward is `pass`: takes no inputs, returns None.
        # Optimal implementation: launch no kernel at all.
        return None

    __call__ = forward


if __name__ == "__main__":
    # Faithful forward: no inputs, returns None, launches nothing.
    enc = RetargetEncoder()
    out = enc()
    assert out is None, "RetargetEncoder.forward must return None (empty forward)"

    # Exercise the Pallas placeholder kernel on small deterministic data to
    # validate the TPU kernel path (lane-dense blocks, cdiv grid).
    key = jax.random.PRNGKey(0)
    x = jax.random.normal(key, (256, 256), dtype=jnp.float32)
    y = _identity_pallas(x)
    jax.block_until_ready(y)
    assert y.shape == x.shape and y.dtype == x.dtype
    # Host-side check (device sync) — smoke test only, never in a benchmark path.
    assert bool(jnp.allclose(y, x))

    # Also exercise the partial-trailing-block (cdiv) path with a small tile.
    x2 = jax.random.normal(jax.random.PRNGKey(1), (200, 128), dtype=jnp.float32)
    y2 = _identity_pallas(x2, max_block_bytes=64 * 128 * 4)  # tile_r=64 -> grid (4,1), last block partial
    jax.block_until_ready(y2)
    assert bool(jnp.allclose(y2, x2))

    print("KERNEL_OK")
</pallas_src>

<mosaic_0001>
module attributes {stable_mosaic.version = 11 : i64} {
  func.func @_copy_kernel(%arg0: i32, %arg1: i32, %arg2: memref<256x256xf32, #tpu.memory_space<vmem>>, %arg3: memref<256x256xf32, #tpu.memory_space<vmem>>) attributes {dimension_semantics = [#tpu.dimension_semantics<parallel>, #tpu.dimension_semantics<parallel>], iteration_bounds = array<i64: 1, 1>, scalar_prefetch = 0 : i64, scratch_operands = 0 : i64, tpu.core_type = #tpu.core_type<tc>, window_params = [{transform_indices = @transform_0, window_bounds = array<i64: 256, 256>}, {transform_indices = @transform_1, window_bounds = array<i64: 256, 256>}]} {
    %c0 = arith.constant 0 : index
    %c0_0 = arith.constant 0 : index
    %0 = vector.load %arg2[%c0, %c0_0] : memref<256x256xf32, #tpu.memory_space<vmem>>, vector<256x256xf32>
    %c0_1 = arith.constant 0 : index
    %c0_2 = arith.constant 0 : index
    %1 = vector.load %arg3[%c0_1, %c0_2] : memref<256x256xf32, #tpu.memory_space<vmem>>, vector<256x256xf32>
    tpu.vector_store %arg3[%c0_1, %c0_2], %0 {strides = array<i32>} : memref<256x256xf32, #tpu.memory_space<vmem>>, vector<256x256xf32>,
    return
  }
  func.func @transform_0(%arg0: i32, %arg1: i32) -> (i32, i32) {
    %c0_i32 = arith.constant 0 : i32
    return %arg0, %arg1 : i32, i32
  }
  func.func @transform_1(%arg0: i32, %arg1: i32) -> (i32, i32) {
    %c0_i32 = arith.constant 0 : i32
    return %arg0, %arg1 : i32, i32
  }
}

</mosaic_0001>

<bundles_post_ra>
// kernel: tpu_custom_call.1
= control target key start
LH: loop header
LB: loop body
LE: loop exit
PB: predicated region body
PF: predicated region fallthrough
CT: control target
= control target key end

     0   :  { %6 = vsyncpa [#allocation3], 0  ;;  %s254_s0 = inlined_call_operand.hbm [shape: f32[256,256], index: 0, kind: input, shape index: {}]   ;;  %s255_s1 = inlined_call_operand.hbm [shape: f32[256,256], index: 1, kind: output, shape index: {}]  }
   0x1   :  { %7 = vsyncpa [#allocation4], 0  ;;  %s12_s8 = sshll.u32 %s254_s0, 4  ;;  %s228_s9 = smov [#allocation2]   ;;  %s13_s8 = int_to_ptr.hbm [resolvable:$true] %s12_s8 }
   0x2   :  { %s14_s10 = sshll.u32 %s228_s9, 4  ;;  %s229_s11 = smov 256   ;;  %s15_s10 = int_to_ptr.vmem [resolvable:$true] %s14_s10 }
   0x3   :  { %s230_s12 = smov 16  }
   0x4   :  { %20 = dma.hbm_to_vmem [thread:$0]  %s13_s8, 8192, %s15_s10, [#allocation3], %s229_s11, %s229_s11, %s230_s12  }
   0x5   :  { %224 = dma.done.wait [#allocation3], 8192  }
   0x6   :  { %225 = vsyncadd [#allocation3], 4294959104  ;;  %v25_v0 = vld [vmem:[#allocation2] sm:$0xff]  ;;  %v26_v1 = vld [vmem:[#allocation2 + $0x8] sm:$0xff]  ;;  %s231_s0 = smov [#allocation5]   ;;  %s159_s16 = sshll.u32 %s255_s1, 4  ;;  %s160_s16 = int_to_ptr.hbm [resolvable:$true] %s159_s16 }
   0x7   :  { %v27_v2 = vld [vmem:[#allocation2 + $0x10] sm:$0xff]  ;;  %89 = vst [vmem:[#allocation5] sm:$0xff] %v25_v0  ;;  %v28_v3 = vld [vmem:[#allocation2 + $0x18] sm:$0xff]  ;;  %v29_v4 = vld [vmem:[#allocation2 + $0x20] sm:$0xff]  ;;  %s157_s13 = sshll.u32 %s231_s0, 4  ;;  %s158_s13 = int_to_ptr.vmem [resolvable:$true] %s157_s13 }
   0x8   :  { %90 = vst [vmem:[#allocation5 + $0x8] sm:$0xff] %v26_v1  ;;  %v30_v5 = vld [vmem:[#allocation2 + $0x28] sm:$0xff]  ;;  %v31_v6 = vld [vmem:[#allocation2 + $0x30] sm:$0xff]  ;;  %v32_v7 = vld [vmem:[#allocation2 + $0x38] sm:$0xff] }
   0x9   :  { %91 = vst [vmem:[#allocation5 + $0x10] sm:$0xff] %v27_v2  ;;  %v33_v8 = vld [vmem:[#allocation2 + $0x40] sm:$0xff]  ;;  %v34_v9 = vld [vmem:[#allocation2 + $0x48] sm:$0xff]  ;;  %v35_v10 = vld [vmem:[#allocation2 + $0x50] sm:$0xff] }
   0xa   :  { %92 = vst [vmem:[#allocation5 + $0x18] sm:$0xff] %v28_v3  ;;  %v36_v11 = vld [vmem:[#allocation2 + $0x58] sm:$0xff]  ;;  %v37_v12 = vld [vmem:[#allocation2 + $0x60] sm:$0xff]  ;;  %v38_v13 = vld [vmem:[#allocation2 + $0x68] sm:$0xff] }
   0xb   :  { %93 = vst [vmem:[#allocation5 + $0x20] sm:$0xff] %v29_v4  ;;  %v39_v14 = vld [vmem:[#allocation2 + $0x70] sm:$0xff]  ;;  %v40_v15 = vld [vmem:[#allocation2 + $0x78] sm:$0xff]  ;;  %v41_v16 = vld [vmem:[#allocation2 + $0x80] sm:$0xff] }
   0xc   :  { %94 = vst [vmem:[#allocation5 + $0x28] sm:$0xff] %v30_v5  ;;  %v42_v17 = vld [vmem:[#allocation2 + $0x88] sm:$0xff]  ;;  %v43_v18 = vld [vmem:[#allocation2 + $0x90] sm:$0xff]  ;;  %v44_v19 = vld [vmem:[#allocation2 + $0x98] sm:$0xff] }
   0xd   :  { %95 = vst [vmem:[#allocation5 + $0x30] sm:$0xff] %v31_v6  ;;  %v45_v20 = vld [vmem:[#allocation2 + $0xa0] sm:$0xff]  ;;  %v46_v21 = vld [vmem:[#allocation2 + $0xa8] sm:$0xff]  ;;  %v47_v22 = vld [vmem:[#allocation2 + $0xb0] sm:$0xff] }
   0xe   :  { %96 = vst [vmem:[#allocation5 + $0x38] sm:$0xff] %v32_v7  ;;  %v48_v23 = vld [vmem:[#allocation2 + $0xb8] sm:$0xff]  ;;  %v49_v24 = vld [vmem:[#allocation2 + $0xc0] sm:$0xff]  ;;  %v50_v25 = vld [vmem:[#allocation2 + $0xc8] sm:$0xff] }
   0xf   :  { %97 = vst [vmem:[#allocation5 + $0x40] sm:$0xff] %v33_v8  ;;  %v51_v26 = vld [vmem:[#allocation2 + $0xd0] sm:$0xff]  ;;  %v52_v27 = vld [vmem:[#allocation2 + $0xd8] sm:$0xff]  ;;  %v53_v28 = vld [vmem:[#allocation2 + $0xe0] sm:$0xff] }
  0x10   :  { %98 = vst [vmem:[#allocation5 + $0x48] sm:$0xff] %v34_v9  ;;  %v54_v29 = vld [vmem:[#allocation2 + $0xe8] sm:$0xff]  ;;  %v55_v30 = vld [vmem:[#allocation2 + $0xf0] sm:$0xff]  ;;  %v56_v31 = vld [vmem:[#allocation2 + $0xf8] sm:$0xff] }
  0x11   :  { %99 = vst [vmem:[#allocation5 + $0x50] sm:$0xff] %v35_v10  ;;  %v57_v32 = vld [vmem:[#allocation2 + $0x100] sm:$0xff]  ;;  %v58_v33 = vld [vmem:[#allocation2 + $0x108] sm:$0xff]  ;;  %v59_v34 = vld [vmem:[#allocation2 + $0x110] sm:$0xff] }
  0x12   :  { %100 = vst [vmem:[#allocation5 + $0x58] sm:$0xff] %v36_v11  ;;  %v60_v35 = vld [vmem:[#allocation2 + $0x118] sm:$0xff]  ;;  %v61_v36 = vld [vmem:[#allocation2 + $0x120] sm:$0xff]  ;;  %v62_v37 = vld [vmem:[#allocation2 + $0x128] sm:$0xff] }
  0x13   :  { %101 = vst [vmem:[#allocation5 + $0x60] sm:$0xff] %v37_v12  ;;  %v63_v38 = vld [vmem:[#allocation2 + $0x130] sm:$0xff]  ;;  %v64_v39 = vld [vmem:[#allocation2 + $0x138] sm:$0xff]  ;;  %v65_v40 = vld [vmem:[#allocation2 + $0x140] sm:$0xff] }
  0x14   :  { %102 = vst [vmem:[#allocation5 + $0x68] sm:$0xff] %v38_v13  ;;  %v66_v41 = vld [vmem:[#allocation2 + $0x148] sm:$0xff]  ;;  %v67_v42 = vld [vmem:[#allocation2 + $0x150] sm:$0xff]  ;;  %v68_v43 = vld [vmem:[#allocation2 + $0x158] sm:$0xff] }
  0x15   :  { %103 = vst [vmem:[#allocation5 + $0x70] sm:$0xff] %v39_v14  ;;  %v69_v44 = vld [vmem:[#allocation2 + $0x160] sm:$0xff]  ;;  %v70_v45 = vld [vmem:[#allocation2 + $0x168] sm:$0xff]  ;;  %v71_v46 = vld [vmem:[#allocation2 + $0x170] sm:$0xff] }
  0x16   :  { %104 = vst [vmem:[#allocation5 + $0x78] sm:$0xff] %v40_v15  ;;  %v72_v47 = vld [vmem:[#allocation2 + $0x178] sm:$0xff]  ;;  %v73_v48 = vld [vmem:[#allocation2 + $0x180] sm:$0xff]  ;;  %v74_v49 = vld [vmem:[#allocation2 + $0x188] sm:$0xff] }
  0x17   :  { %105 = vst [vmem:[#allocation5 + $0x80] sm:$0xff] %v41_v16  ;;  %v75_v50 = vld [vmem:[#allocation2 + $0x190] sm:$0xff]  ;;  %v76_v51 = vld [vmem:[#allocation2 + $0x198] sm:$0xff]  ;;  %v77_v52 = vld [vmem:[#allocation2 + $0x1a0] sm:$0xff] }
  0x18   :  { %106 = vst [vmem:[#allocation5 + $0x88] sm:$0xff] %v42_v17  ;;  %v78_v53 = vld [vmem:[#allocation2 + $0x1a8] sm:$0xff]  ;;  %v79_v54 = vld [vmem:[#allocation2 + $0x1b0] sm:$0xff]  ;;  %v80_v55 = vld [vmem:[#allocation2 + $0x1b8] sm:$0xff] }
  0x19   :  { %107 = vst [vmem:[#allocation5 + $0x90] sm:$0xff] %v43_v18  ;;  %v81_v56 = vld [vmem:[#allocation2 + $0x1c0] sm:$0xff]  ;;  %v82_v57 = vld [vmem:[#allocation2 + $0x1c8] sm:$0xff]  ;;  %v83_v58 = vld [vmem:[#allocation2 + $0x1d0] sm:$0xff] }
  0x1a   :  { %108 = vst [vmem:[#allocation5 + $0x98] sm:$0xff] %v44_v19  ;;  %v84_v59 = vld [vmem:[#allocation2 + $0x1d8] sm:$0xff]  ;;  %v85_v60 = vld [vmem:[#allocation2 + $0x1e0] sm:$0xff]  ;;  %v86_v61 = vld [vmem:[#allocation2 + $0x1e8] sm:$0xff] }
  0x1b   :  { %109 = vst [vmem:[#allocation5 + $0xa0] sm:$0xff] %v45_v20  ;;  %v87_v62 = vld [vmem:[#allocation2 + $0x1f0] sm:$0xff]  ;;  %v88_v63 = vld [vmem:[#allocation2 + $0x1f8] sm:$0xff] }
  0x1c   :  { %110 = vst [vmem:[#allocation5 + $0xa8] sm:$0xff] %v46_v21 }
  0x1d   :  { %111 = vst [vmem:[#allocation5 + $0xb0] sm:$0xff] %v47_v22 }
  0x1e   :  { %112 = vst [vmem:[#allocation5 + $0xb8] sm:$0xff] %v48_v23 }
  0x1f   :  { %113 = vst [vmem:[#allocation5 + $0xc0] sm:$0xff] %v49_v24 }
  0x20   :  { %114 = vst [vmem:[#allocation5 + $0xc8] sm:$0xff] %v50_v25 }
  0x21   :  { %115 = vst [vmem:[#allocation5 + $0xd0] sm:$0xff] %v51_v26 }
  0x22   :  { %116 = vst [vmem:[#allocation5 + $0xd8] sm:$0xff] %v52_v27 }
  0x23   :  { %117 = vst [vmem:[#allocation5 + $0xe0] sm:$0xff] %v53_v28 }
  0x24   :  { %118 = vst [vmem:[#allocation5 + $0xe8] sm:$0xff] %v54_v29 }
  0x25   :  { %119 = vst [vmem:[#allocation5 + $0xf0] sm:$0xff] %v55_v30 }
  0x26   :  { %120 = vst [vmem:[#allocation5 + $0xf8] sm:$0xff] %v56_v31 }
  0x27   :  { %121 = vst [vmem:[#allocation5 + $0x100] sm:$0xff] %v57_v32 }
  0x28   :  { %122 = vst [vmem:[#allocation5 + $0x108] sm:$0xff] %v58_v33 }
  0x29   :  { %123 = vst [vmem:[#allocation5 + $0x110] sm:$0xff] %v59_v34 }
  0x2a   :  { %124 = vst [vmem:[#allocation5 + $0x118] sm:$0xff] %v60_v35 }
  0x2b   :  { %125 = vst [vmem:[#allocation5 + $0x120] sm:$0xff] %v61_v36 }
  0x2c   :  { %126 = vst [vmem:[#allocation5 + $0x128] sm:$0xff] %v62_v37 }
  0x2d   :  { %127 = vst [vmem:[#allocation5 + $0x130] sm:$0xff] %v63_v38 }
  0x2e   :  { %128 = vst [vmem:[#allocation5 + $0x138] sm:$0xff] %v64_v39 }
  0x2f   :  { %129 = vst [vmem:[#allocation5 + $0x140] sm:$0xff] %v65_v40 }
  0x30   :  { %130 = vst [vmem:[#allocation5 + $0x148] sm:$0xff] %v66_v41 }
  0x31   :  { %131 = vst [vmem:[#allocation5 + $0x150] sm:$0xff] %v67_v42 }
  0x32   :  { %132 = vst [vmem:[#allocation5 + $0x158] sm:$0xff] %v68_v43 }
  0x33   :  { %133 = vst [vmem:[#allocation5 + $0x160] sm:$0xff] %v69_v44 }
  0x34   :  { %134 = vst [vmem:[#allocation5 + $0x168] sm:$0xff] %v70_v45 }
  0x35   :  { %135 = vst [vmem:[#allocation5 + $0x170] sm:$0xff] %v71_v46 }
  0x36   :  { %136 = vst [vmem:[#allocation5 + $0x178] sm:$0xff] %v72_v47 }
  0x37   :  { %137 = vst [vmem:[#allocation5 + $0x180] sm:$0xff] %v73_v48 }
  0x38   :  { %138 = vst [vmem:[#allocation5 + $0x188] sm:$0xff] %v74_v49 }
  0x39   :  { %139 = vst [vmem:[#allocation5 + $0x190] sm:$0xff] %v75_v50 }
  0x3a   :  { %140 = vst [vmem:[#allocation5 + $0x198] sm:$0xff] %v76_v51 }
  0x3b   :  { %141 = vst [vmem:[#allocation5 + $0x1a0] sm:$0xff] %v77_v52 }
  0x3c   :  { %142 = vst [vmem:[#allocation5 + $0x1a8] sm:$0xff] %v78_v53 }
  0x3d   :  { %143 = vst [vmem:[#allocation5 + $0x1b0] sm:$0xff] %v79_v54 }
  0x3e   :  { %144 = vst [vmem:[#allocation5 + $0x1b8] sm:$0xff] %v80_v55 }
  0x3f   :  { %145 = vst [vmem:[#allocation5 + $0x1c0] sm:$0xff] %v81_v56 }
  0x40   :  { %146 = vst [vmem:[#allocation5 + $0x1c8] sm:$0xff] %v82_v57 }
  0x41   :  { %147 = vst [vmem:[#allocation5 + $0x1d0] sm:$0xff] %v83_v58 }
  0x42   :  { %148 = vst [vmem:[#allocation5 + $0x1d8] sm:$0xff] %v84_v59 }
  0x43   :  { %149 = vst [vmem:[#allocation5 + $0x1e0] sm:$0xff] %v85_v60 }
  0x44   :  { %150 = vst [vmem:[#allocation5 + $0x1e8] sm:$0xff] %v86_v61 }
  0x45   :  { %151 = vst [vmem:[#allocation5 + $0x1f0] sm:$0xff] %v87_v62 }
  0x46   :  { %152 = vst [vmem:[#allocation5 + $0x1f8] sm:$0xff] %v88_v63 }
  0x47   :  { %165 = dma.vmem_to_hbm [thread:$0]  %s158_s13, 8192, %s160_s16, [#allocation4], %s229_s11, %s229_s11, %s230_s12  }
  0x48   :  { %226 = dma.done.wait [#allocation4], 8192  }
  0x49   :  { %227 = vsyncadd [#allocation4], 4294959104 }
  0x4a   :  { %170 = vsyncpa [#allocation3], 1 }
  0x4b   :  { %171 = vsyncpa [#allocation4], 1 }

</bundles_post_ra>
